<compile_context>
chip_gen: v5e
topology: v5e:2x2
jax: 0.10.0
libtpu: 0.0.40
codegen_flags: <defaults>
</compile_context>

<pallas_src>
import jax
import jax.numpy as jnp
from jax.experimental import pallas as pl
from jax.experimental.pallas import tpu as pltpu


def _localcnn_kernel(x_ref, w1_ref, w2_ref, wf_ref, fused_ref, aux_ref):
    # x_ref:   [C,    TN]   channels on sublanes, spatial positions on lanes
    # w1_ref:  [nb*R, C]    all branch conv1 weights stacked along the out axis
    # w2_ref:  [nb,  nb*R]  block-diagonal branch conv2 weights
    # wf_ref:  [C,   C]     fuse conv weight ([out, in])
    # fused_ref: [C,   TN]
    # aux_ref:   [nb+1, TN] rows 0..nb-1 = att_k, row nb = max_k att_k
    nb = aux_ref.shape[0] - 1
    x = x_ref[...]                                                       # native dtype, no f32 copy

    # Branch phase: one fused matmul pair (f32 accumulation on the MXU).
    h = jnp.dot(w1_ref[...], x, preferred_element_type=jnp.float32)     # [nb*R, TN] f32
    h = jnp.maximum(h, 0.0)                                              # ReLU
    att = jax.nn.sigmoid(
        jnp.dot(w2_ref[...].astype(jnp.float32), h,
                preferred_element_type=jnp.float32))                    # [nb, TN] f32
    m = jnp.max(att, axis=0, keepdims=True)                              # [1, TN] f32

    # Single lane-dense aux writeback: [att_0..att_{nb-1}, M].
    aux_ref[...] = jnp.concatenate([att, m], axis=0).astype(aux_ref.dtype)

    # Hadamard in x's dtype (cast m down, not x up), then fuse conv.
    xw = x * m.astype(x.dtype)                                           # [C, TN]
    fused_ref[...] = jnp.dot(
        wf_ref[...], xw, preferred_element_type=jnp.float32
    ).astype(fused_ref.dtype)


def _pick_spatial_tile(hw_pad, max_tile, batch, min_grid_steps=4):
    """Largest 128-multiple tile dividing hw_pad, capped at max_tile, shrunk
    until batch * n_spatial_tiles >= min_grid_steps (megacore grain)."""
    def largest_divisor_tile(cap):
        t = min(cap, hw_pad)
        t = max(128, (t // 128) * 128)
        while t >= 128:
            if hw_pad % t == 0:
                return t
            t -= 128
        return 128

    tile = largest_divisor_tile(max_tile)
    while tile > 128 and batch * (hw_pad // tile) < min_grid_steps:
        nxt = largest_divisor_tile(tile - 128)
        if nxt >= tile:
            break
        tile = nxt
    return tile


def local_cnn_forward(x_nchw, w1, w2, wf, *, max_tile_hw=1024, aux_dtype=None):
    """x_nchw: [B, C, H, W]
       w1: [nb, R, C]  (branch conv1 weights, PyTorch [out, in] order, 1x1 squeezed)
       w2: [nb, 1, R]  (branch conv2 weights)
       wf: [C, C]      (fuse conv weight, [out, in])
    Returns (fused [B,C,H,W], att_maps list of [B,1,H,W], M_out [B,1,H,W])."""
    B, C, H, W = x_nchw.shape
    nb, R, _ = w1.shape
    HW = H * W
    xdt = x_nchw.dtype
    aux_dt = jnp.dtype(aux_dtype) if aux_dtype is not None else jnp.dtype(xdt)

    # Pure reshape (contiguous NCHW): channels stay on sublanes, spatial -> lanes.
    x3 = x_nchw.reshape(B, C, HW)
    # Pad spatial axis to a multiple of 128 so tiles stay lane-aligned & bounded.
    HW_pad = ((HW + 127) // 128) * 128
    if HW_pad != HW:
        x3 = jnp.pad(x3, ((0, 0), (0, 0), (0, HW_pad - HW)))

    tile_hw = _pick_spatial_tile(HW_pad, max_tile_hw, B)
    n_sp = HW_pad // tile_hw
    grid = (B, n_sp)

    # Fuse per-branch weights once in the wrapper (weights are tiny).
    # Keep weights in x's dtype -> native bf16 MXU path when x is bf16.
    wdt = xdt
    w1cat = w1.reshape(nb * R, C).astype(wdt)                              # [nb*R, C]
    eye = jnp.eye(nb, dtype=jnp.float32)
    w2blk = (eye[:, :, None] * w2[None, :, 0, :].astype(jnp.float32)
             ).reshape(nb, nb * R).astype(wdt)                             # [nb, nb*R]
    wf_c = wf.astype(wdt)                                                  # [C, C]

    # --- VMEM / cost bookkeeping -------------------------------------------
    ib_x = jnp.dtype(xdt).itemsize
    ib_aux = aux_dt.itemsize
    tile_io = tile_hw * (C * ib_x + C * ib_x + (nb + 1) * ib_aux)          # x in + fused + aux out
    scratch = tile_hw * 4 * (nb * R + nb + 1) + tile_hw * C * ib_x         # h, att, m, xw temporaries
    weights_bytes = (w1cat.size + w2blk.size + wf_c.size) * jnp.dtype(wdt).itemsize
    vmem_est = 2 * tile_io + scratch + weights_bytes                        # double-buffered I/O

    cp_kwargs = dict(dimension_semantics=("parallel", "parallel"))
    if vmem_est > 12 * 1024 * 1024:
        # Leave headroom for Mosaic internal scratch; v7x only has 64 MiB/TC.
        cp_kwargs["vmem_limit_bytes"] = int(min(2 * vmem_est, 48 * 1024 * 1024))

    flops = 2 * B * HW_pad * (nb * R * C + nb * (nb * R) + C * C)
    transcendentals = B * HW_pad * nb                                       # sigmoid
    bytes_accessed = (B * C * HW_pad * ib_x            # x read
                      + B * C * HW_pad * ib_x          # fused write
                      + B * (nb + 1) * HW_pad * ib_aux  # aux write
                      + weights_bytes)
    cost = pl.CostEstimate(flops=int(flops), transcendentals=int(transcendentals),
                           bytes_accessed=int(bytes_accessed))

    fused3, aux3 = pl.pallas_call(
        _localcnn_kernel,
        out_shape=(
            jax.ShapeDtypeStruct((B, C, HW_pad), xdt),
            jax.ShapeDtypeStruct((B, nb + 1, HW_pad), aux_dt),
        ),
        grid_spec=pltpu.PrefetchScalarGridSpec(
            num_scalar_prefetch=0,
            grid=grid,
            in_specs=[
                pl.BlockSpec((None, C, tile_hw), lambda b, s: (b, 0, s)),
                pl.BlockSpec((nb * R, C), lambda b, s: (0, 0)),
                pl.BlockSpec((nb, nb * R), lambda b, s: (0, 0)),
                pl.BlockSpec((C, C), lambda b, s: (0, 0)),
            ],
            out_specs=[
                pl.BlockSpec((None, C, tile_hw), lambda b, s: (b, 0, s)),
                pl.BlockSpec((None, nb + 1, tile_hw), lambda b, s: (b, 0, s)),
            ],
        ),
        compiler_params=pltpu.CompilerParams(**cp_kwargs),
        cost_estimate=cost,
    )(x3, w1cat, w2blk, wf_c)

    # Strip padding and unpack.
    fused = fused3[:, :, :HW].reshape(B, C, H, W)
    aux = aux3[:, :, :HW]
    att = aux[:, :nb].reshape(B, nb, H, W)
    m_out = aux[:, nb:nb + 1].reshape(B, 1, H, W)
    att_maps = [att[:, k:k + 1] for k in range(nb)]                        # list of [B,1,H,W]
    return fused, att_maps, m_out


def _reference(x_nchw, w1, w2, wf):
    """Plain-JAX reference for validation (same eval-mode semantics)."""
    nb, R, _ = w1.shape
    x = x_nchw.astype(jnp.float32)
    hp = jax.lax.Precision.HIGHEST
    atts = []
    for k in range(nb):
        h = jnp.einsum('rc,bchw->brhw', w1[k], x, precision=hp)
        h = jnp.maximum(h, 0.0)
        a = jnp.einsum('or,brhw->bohw', w2[k], h, precision=hp)
        atts.append(jax.nn.sigmoid(a))
    att = jnp.concatenate(atts, axis=1)                                    # [B, nb, H, W]
    m = jnp.max(att, axis=1, keepdims=True)                                # [B, 1, H, W]
    fused = jnp.einsum('oc,bchw->bohw', wf, x * m, precision=hp)           # [B, C, H, W]
    return fused, att, m


def _check(x, w1, w2, wf, atol=1e-4, rtol=1e-4):
    fused, att_maps, m_out = local_cnn_forward(x, w1, w2, wf)
    jax.block_until_ready(fused)
    jax.block_until_ready(m_out)
    ref_fused, ref_att, ref_m = _reference(x, w1, w2, wf)
    B, C, H, W = x.shape
    nb = w1.shape[0]
    assert fused.shape == (B, C, H, W)
    assert m_out.shape == (B, 1, H, W)
    assert len(att_maps) == nb and att_maps[0].shape == (B, 1, H, W)
    assert jnp.allclose(fused.astype(jnp.float32), ref_fused, atol=atol, rtol=rtol)
    assert jnp.allclose(m_out.astype(jnp.float32), ref_m, atol=atol, rtol=rtol)
    assert jnp.allclose(jnp.concatenate(att_maps, axis=1).astype(jnp.float32),
                        ref_att, atol=atol, rtol=rtol)


if __name__ == "__main__":
    # Small shapes consistent with the module: B=2, C=4, H=W=16.
    B, C, H, W = 2, 4, 16, 16
    num_branches = 4
    reduction_ratio = 16
    R = max(C // reduction_ratio, 8)  # reduced channels (== 8 here)

    key = jax.random.PRNGKey(0)
    kx, k1, k2, kf = jax.random.split(key, 4)

    x = jax.random.normal(kx, (B, C, H, W), dtype=jnp.float32)
    # Weights in PyTorch conv layout [out, in] (1x1 kernel dims squeezed).
    w1 = jax.random.normal(k1, (num_branches, R, C), dtype=jnp.float32) * 0.1
    w2 = jax.random.normal(k2, (num_branches, 1, R), dtype=jnp.float32) * 0.1
    wf = jax.random.normal(kf, (C, C), dtype=jnp.float32) * 0.1

    # Main check (HW = 256, already 128-aligned).
    _check(x, w1, w2, wf)

    # Padding path check: H=W=15 -> HW=225, padded to 256 and sliced back.
    x_odd = jax.random.normal(kx, (B, C, 15, 15), dtype=jnp.float32)
    _check(x_odd, w1, w2, wf)

    print("KERNEL_OK")
</pallas_src>

<mosaic_0001>
module attributes {stable_mosaic.version = 11 : i64} {
  func.func @_localcnn_kernel(%arg0: i32, %arg1: i32, %arg2: memref<1x4x128xf32, #tpu.memory_space<vmem>>, %arg3: memref<32x4xf32, #tpu.memory_space<vmem>>, %arg4: memref<4x32xf32, #tpu.memory_space<vmem>>, %arg5: memref<4x4xf32, #tpu.memory_space<vmem>>, %arg6: memref<1x4x128xf32, #tpu.memory_space<vmem>>, %arg7: memref<1x5x128xf32, #tpu.memory_space<vmem>>) attributes {dimension_semantics = [#tpu.dimension_semantics<parallel>, #tpu.dimension_semantics<parallel>], iteration_bounds = array<i64: 2, 2>, scalar_prefetch = 0 : i64, scratch_operands = 0 : i64, tpu.core_type = #tpu.core_type<tc>, window_params = [{transform_indices = @transform_0, window_bounds = array<i64: 1, 4, 128>}, {pipeline_mode = #tpu.pipeline_mode<synchronous>, transform_indices = @transform_1, window_bounds = array<i64: 32, 4>}, {pipeline_mode = #tpu.pipeline_mode<synchronous>, transform_indices = @transform_2, window_bounds = array<i64: 4, 32>}, {pipeline_mode = #tpu.pipeline_mode<synchronous>, transform_indices = @transform_3, window_bounds = array<i64: 4, 4>}, {transform_indices = @transform_4, window_bounds = array<i64: 1, 4, 128>}, {transform_indices = @transform_5, window_bounds = array<i64: 1, 5, 128>}]} {
    %c0 = arith.constant 0 : index
    %c0_0 = arith.constant 0 : index
    %c0_1 = arith.constant 0 : index
    %0 = vector.load %arg2[%c0, %c0_0, %c0_1] : memref<1x4x128xf32, #tpu.memory_space<vmem>>, vector<1x4x128xf32>
    %1 = vector.shape_cast %0 : vector<1x4x128xf32> to vector<4x128xf32>
    %c0_2 = arith.constant 0 : index
    %c0_3 = arith.constant 0 : index
    %2 = vector.load %arg3[%c0_2, %c0_3] : memref<32x4xf32, #tpu.memory_space<vmem>>, vector<32x4xf32>
    %cst = arith.constant dense<0.000000e+00> : vector<32x128xf32>
    %3 = tpu.matmul %2, %1, %cst {dimension_numbers = #tpu.dot_dimension_numbers<[1], [0], [0], [1], [0, 0, 1, 1], [], []>} : vector<32x4xf32>, vector<4x128xf32>, vector<32x128xf32> -> vector<32x128xf32>
    %cst_4 = arith.constant 0.000000e+00 : f32
    %4 = vector.broadcast %cst_4 : f32 to vector<32x128xf32>
    %5 = arith.maximumf %3, %4 : vector<32x128xf32>
    %c0_5 = arith.constant 0 : index
    %c0_6 = arith.constant 0 : index
    %6 = vector.load %arg4[%c0_5, %c0_6] : memref<4x32xf32, #tpu.memory_space<vmem>>, vector<4x32xf32>
    %cst_7 = arith.constant dense<0.000000e+00> : vector<4x128xf32>
    %7 = tpu.matmul %6, %5, %cst_7 {dimension_numbers = #tpu.dot_dimension_numbers<[1], [0], [0], [1], [0, 0, 1, 1], [], []>} : vector<4x32xf32>, vector<32x128xf32>, vector<4x128xf32> -> vector<4x128xf32>
    %8 = arith.negf %7 : vector<4x128xf32>
    %9 = math.exp %8 : vector<4x128xf32>
    %cst_8 = arith.constant 1.000000e+00 : f32
    %10 = vector.broadcast %cst_8 : f32 to vector<4x128xf32>
    %11 = arith.addf %10, %9 : vector<4x128xf32>
    %12 = arith.divf %10, %11 : vector<4x128xf32>
    %cst_9 = arith.constant dense<0xFF800000> : vector<128xf32>
    %13 = vector.multi_reduction <maximumf>, %12, %cst_9 [0] : vector<4x128xf32> to vector<128xf32>
    %14 = vector.shape_cast %13 : vector<128xf32> to vector<1x128xf32>
    %15 = tpu.concatenate %12, %14 in 0 : vector<4x128xf32>, vector<1x128xf32> -> vector<5x128xf32>
    %c0_10 = arith.constant 0 : index
    %c0_11 = arith.constant 0 : index
    %c0_12 = arith.constant 0 : index
    %16 = vector.load %arg7[%c0_10, %c0_11, %c0_12] : memref<1x5x128xf32, #tpu.memory_space<vmem>>, vector<1x5x128xf32>
    %17 = vector.shape_cast %16 : vector<1x5x128xf32> to vector<5x128xf32>
    %18 = vector.shape_cast %15 : vector<5x128xf32> to vector<1x5x128xf32>
    tpu.vector_store %arg7[%c0_10, %c0_11, %c0_12], %18 {strides = array<i32>} : memref<1x5x128xf32, #tpu.memory_space<vmem>>, vector<1x5x128xf32>,
    %19 = vector.broadcast %14 : vector<1x128xf32> to vector<4x128xf32>
    %20 = arith.mulf %1, %19 : vector<4x128xf32>
    %c0_13 = arith.constant 0 : index
    %c0_14 = arith.constant 0 : index
    %21 = vector.load %arg5[%c0_13, %c0_14] : memref<4x4xf32, #tpu.memory_space<vmem>>, vector<4x4xf32>
    %cst_15 = arith.constant dense<0.000000e+00> : vector<4x128xf32>
    %22 = tpu.matmul %21, %20, %cst_15 {dimension_numbers = #tpu.dot_dimension_numbers<[1], [0], [0], [1], [0, 0, 1, 1], [], []>} : vector<4x4xf32>, vector<4x128xf32>, vector<4x128xf32> -> vector<4x128xf32>
    %c0_16 = arith.constant 0 : index
    %c0_17 = arith.constant 0 : index
    %c0_18 = arith.constant 0 : index
    %23 = vector.load %arg6[%c0_16, %c0_17, %c0_18] : memref<1x4x128xf32, #tpu.memory_space<vmem>>, vector<1x4x128xf32>
    %24 = vector.shape_cast %23 : vector<1x4x128xf32> to vector<4x128xf32>
    %25 = vector.shape_cast %22 : vector<4x128xf32> to vector<1x4x128xf32>
    tpu.vector_store %arg6[%c0_16, %c0_17, %c0_18], %25 {strides = array<i32>} : memref<1x4x128xf32, #tpu.memory_space<vmem>>, vector<1x4x128xf32>,
    return
  }
  func.func @transform_0(%arg0: i32, %arg1: i32) -> (i32, i32, i32) {
    %c0_i32 = arith.constant 0 : i32
    %c0_i32_0 = arith.constant 0 : i32
    return %arg0, %c0_i32, %arg1 : i32, i32, i32
  }
  func.func @transform_1(%arg0: i32, %arg1: i32) -> (i32, i32) {
    %c0_i32 = arith.constant 0 : i32
    %c0_i32_0 = arith.constant 0 : i32
    %c0_i32_1 = arith.constant 0 : i32
    return %c0_i32, %c0_i32_0 : i32, i32
  }
  func.func @transform_2(%arg0: i32, %arg1: i32) -> (i32, i32) {
    %c0_i32 = arith.constant 0 : i32
    %c0_i32_0 = arith.constant 0 : i32
    %c0_i32_1 = arith.constant 0 : i32
    return %c0_i32, %c0_i32_0 : i32, i32
  }
  func.func @transform_3(%arg0: i32, %arg1: i32) -> (i32, i32) {
    %c0_i32 = arith.constant 0 : i32
    %c0_i32_0 = arith.constant 0 : i32
    %c0_i32_1 = arith.constant 0 : i32
    return %c0_i32, %c0_i32_0 : i32, i32
  }
  func.func @transform_4(%arg0: i32, %arg1: i32) -> (i32, i32, i32) {
    %c0_i32 = arith.constant 0 : i32
    %c0_i32_0 = arith.constant 0 : i32
    return %arg0, %c0_i32, %arg1 : i32, i32, i32
  }
  func.func @transform_5(%arg0: i32, %arg1: i32) -> (i32, i32, i32) {
    %c0_i32 = arith.constant 0 : i32
    %c0_i32_0 = arith.constant 0 : i32
    return %arg0, %c0_i32, %arg1 : i32, i32, i32
  }
}

</mosaic_0001>

<bundles_post_ra>
// kernel: tpu_custom_call.1
= control target key start
LH: loop header
LB: loop body
LE: loop exit
PB: predicated region body
PF: predicated region fallthrough
CT: control target
= control target key end

     0   :  { %s932_s0 = inlined_call_operand.vmem [shape: f32[2,4,256], index: 0, kind: input, shape index: {}]   ;;  %s933_s1 = inlined_call_operand.vmem [shape: f32[32,4], index: 1, kind: input, shape index: {}]   ;;  %s934_s2 = inlined_call_operand.vmem [shape: f32[4,32], index: 2, kind: input, shape index: {}]   ;;  %s935_s3 = inlined_call_operand.vmem [shape: f32[4,4], index: 3, kind: input, shape index: {}]   ;;  %s936_s4 = inlined_call_operand.hbm [shape: f32[2,4,256], index: 4, kind: output, shape index: {0}]   ;;  %s937_s5 = inlined_call_operand.vmem [shape: f32[2,5,256], index: 5, kind: output, shape index: {1}]  }
   0x1   :  { %938 = sst [smem:[#allocation5_spill]] %s932_s0 }
   0x2   :  { %939 = sst [smem:[#allocation6_spill]] %s933_s1 }
   0x3   :  { %11 = vsyncpa [#allocation3], 0 }
   0x4   :  { %13 = vsyncpa [#allocation3 + $0x1], 0  ;;  %s775_s18 = smov 0   ;;  %s777_s19 = smov 0  }
   0x5   :  { %s779_s20 = smov 0   ;;  %s781_s21 = smov 0  }
   0x6   :  { %s783_s22 = smov 0   ;;  %s785_s23 = smov 0  }
   0x7   :  { %s787_s24 = smov 0   ;;  %s789_s25 = smov 0  }
   0x8 LB: > { %s549_s26 = sadd.s32 4294967295, %s743_s25   ;;  %s550_s27 = sadd.s32 4294967294, %s743_s25   ;;  %s743_s25 = sphi %s789_s25, %s19_s25   ;;  %s739_s24 = sphi %s787_s24, %s950_s24   ;;  %s735_s23 = sphi %s785_s23, %s949_s23   ;;  %s731_s22 = sphi %s783_s22, %s948_s22   ;;  %s727_s21 = sphi %s781_s21, %s947_s21   ;;  %s723_s20 = sphi %s779_s20, %s946_s20   ;;  %s719_s19 = sphi %s777_s19, %s945_s19   ;;  %s715_s18 = sphi %s775_s18, %s944_s18  }
   0x9   : > { %s28_s28 = sadd.s32 1, %s735_s23  ;;  %s31_s29 = sadd.s32 1, %s739_s24 }
   0xa   : > { %p29_p0 = scmp.ge.s32.totalorder %s28_s28, 2  ;;  %p141_p1 = scmp.ne.s32.totalorder %s723_s20, %s719_s19 }
   0xb   : > { %p142_p2 = scmp.eq.s32.totalorder %s549_s26, 3  ;;  %p147_p5 = scmp.ne.s32.totalorder %s719_s19, %s715_s18 }
   0xc   : > { %s952_s28 = smov (%p29_p0, %s28_s28), 0  ;;  %s954_s29 = smov (!%p29_p0, %s31_s29), %s739_s24 }
   0xd   : > { %s127_s30 = ssub.s32 %s735_s23, %s952_s28  ;;  %p826_p3 = por %p142_p2, %p141_p1 }
   0xe   : > { %p33_p4 = scmp.ge.s32.totalorder %s954_s29, 2  ;;  %p148_p6 = scmp.eq.s32.totalorder %s550_s27, 3 }
   0xf   : > { %p553_p7 = scmp.ge.s32.totalorder %s743_s25, 1  ;;  %p214_p9 = scmp.lt.s32.totalorder %s743_s25, 5 }
  0x10   : > { %s956_s29 = smov (%p33_p4, %s954_s29), 0  ;;  %p835_p8 = por %p148_p6, %p147_p5 }
  0x11   : > { %s126_s8 = ssub.s32 %s739_s24, %s956_s29  ;;  %s131_s9 = sadd.s32 1, %s723_s20 }
  0x12   : > { %s128_s10 = sor.u32 %s127_s30, %s126_s8  ;;  %p215_p10 = pnand %p553_p7, %p214_p9 }
  0x13   : > { %p129_p11 = scmp.eq.s32.totalorder %s128_s10, 0  ;;  %p253_p12 = scmp.lt.s32.totalorder (!%p215_p10), %s731_s22, 1 }
  0x14   : > { %218 = sbr.rel (%p215_p10) target bundleno = 487 (0x1e7), region = 36  ;;  %p255_p13 = scmp.lt.s32.totalorder (!%p215_p10), %s727_s21, 1 }
  0x15   : > { %s844_s11 = scalar_select %p129_p11, %s723_s20, %s131_s9  }
  0x16   : > { %s942_s0 = sld [smem:[#allocation5_spill]] (!%p215_p10) }
  0x17   : > { %s943_s1 = sld [smem:[#allocation6_spill]] (!%p215_p10) }
  0x19   : > { %s254_s12 = scalar_select %p253_p12, %s731_s22, 1  ;;  %vm287_vm0 = vcmask 1043456   ;;  %vm274_vm1 = vcmask 31744   ;;  %v324_v13 = vld [vmem:[%s934_s2] sm:$0xf]  ;;  %vm325_vm2 = vcmask 261120  }
  0x1a   : > { %s256_s13 = scalar_select %p255_p13, %s727_s21, 1  ;;  %v378_v37 = vld [vmem:[%s935_s3] sm:$0xf] }
  0x1b   : > { %s555_s14 = sshll.u32 %s254_s12, 1 }
  0x1c   : > { %s850_s15 = sadd.s32 %s555_s14, %s256_s13  ;;  %s569_s13 = sshll.u32 %s731_s22, 1 }
  0x1d   : > { %s556_s16 = sshll.u32 %s850_s15, 2  ;;  %v272_v0 = vld [vmem:[%s943_s1 + $0x10] sm:$0xff]  ;;  %v270_v1 = vld [vmem:[%s943_s1] sm:$0xff]  ;;  %v273_v3 = vld [vmem:[%s943_s1 + $0x18] sm:$0xff]  ;;  %s425_s14 = sadd.s32 %s727_s21, %s569_s13 }
  0x1e   : > { %s260_s27 = scalar_lea.vmem %s942_s0, %s556_s16  ;;  %v271_v4 = vld [vmem:[%s943_s1 + $0x8] sm:$0xff]  ;;  %s570_s17 = sshll.u32 %s425_s14, 2 }
  0x1f   : > { %v269_v2 = vld [vmem:[%s260_s27] sm:$0xf]  ;;  %s558_s27 = sshll.u32 %s850_s15, 3  ;;  %s240_s15 = sand.u32 1, %s719_s19  }
  0x20   : > { %573 = vmatpush.msk.msra.mxu3 %vm287_vm0, %v269_v2  ;;  %559 = vmatpush.msk.msra.mxu0 %vm287_vm0, %v269_v2  ;;  %s268_s9 = scalar_lea.vmem %s937_s5, %s558_s27  ;;  %s554_s16 = sshll.u32 %s240_s15, 2 }
  0x21   : > { %562 = vmatmul.msk.f32.vlgmr.msra.gmra.mxu3 %vm274_vm1, %v272_v0  ;;  %560 = vmatmul.msk.f32.vlgmr.msra.gmra.mxu0 %vm274_vm1, %v270_v1  ;;  %s427_s30 = scalar_lea.hbm %s936_s4, %s570_s17  ;;  %s242_s8 = scalar_lea.vmem [#allocation2], %s554_s16 }
  0x22   : > { %s429_s0 = sshll.u32 %s242_s8, 4  ;;  %s431_s1 = sshll.u32 %s427_s30, 4  ;;  %s430_s0 = int_to_ptr.vmem [resolvable:$true] %s429_s0  ;;  %s432_s1 = int_to_ptr.hbm [resolvable:$true] %s431_s1 }
  0x23   : > { %s663_s10 = sshra.s32 %s432_s1, 4  ;;  %s669_s13 = scalar_lea.hbm %s936_s4, 16  ;;  %s664_s10 = int_to_ptr.hbm [resolvable:$true] %s663_s10 }
  0x24   : > { %s665_s22 = scalar_lea.hbm %s664_s10, 4  ;;  %p670_p4 = scmp.lt.s32.totalorder %s664_s10, %s936_s4 }
  0x25   : > { %p666_p0 = scmp.ne.s32.totalorder %s664_s10, %s665_s22  ;;  %p671_p5 = scmp.lt.s32.totalorder %s669_s13, %s665_s22 }
  0x27   : > { %p667_p1 = pnand %p666_p0, %p826_p3  ;;  %p672_p6 = por %p671_p5, %p670_p4 }
  0x29   : > { %563 = vmatmul.msk.f32.gmra.mxu3 %vm274_vm1, %v273_v3  ;;  %561 = vmatmul.msk.f32.gmra.mxu0 %vm274_vm1, %v271_v4  ;;  %p668_p2 = pneg %p667_p1 }
  0x2b   : > { %p673_p7 = pnand %p672_p6, %p668_p2 }
  0x9e   : > { %v308_v5 = vpop.f32.mrf.mxu0 }
  0x9f   : > { %v320_v12 = vmax.f32 %v308_v5, 0.0 }
  0xa4   : > { %v314_v6 = vpop.f32.mrf.mxu3 }
  0xa5   : > { %v322_v10 = vmax.f32 %v314_v6, 0.0 }
  0xa6   : > { %v311_v8 = vpop.f32.mrf.mxu0 }
  0xa7   : > { %v321_v11 = vmax.f32 %v311_v8, 0.0 }
  0xac   : > { %v317_v7 = vpop.f32.mrf.mxu3 }
  0xad   : > { %v323_v9 = vmax.f32 %v317_v7, 0.0 }
  0xaf   : > { %341 = vmatpush.msra.mxu1 %v323_v9 }
  0xb1   : > { %342 = vmatpush.msra.mxu1 %v322_v10 }
  0xb3   : > { %343 = vmatpush.msra.mxu1 %v321_v11 }
  0xb5   : > { %344 = vmatpush.msra.mxu1 %v320_v12 }
  0xb6   : > { %564 = vmatmul.msk.f32.vlgmr.msra.gmra.mxu1 %vm325_vm2, %v324_v13 }
 0x133   : > { %v346_v14 = vpop.f32.mrf.mxu1 }
 0x134   : > { %v565_v15 = vmul.f32 -1.442695, %v346_v14 }
 0x136   : > { %645 = vpow2.f32 %v565_v15 }
 0x13c   : > { %v646_v16 = vpop.eup %645 }
 0x13d   : > { %v352_v17 = vadd.f32 1.0, %v646_v16 }
 0x13f   : > { %647 = vrcp.f32 %v352_v17  ;;  %v364_v21 = vand.u32 2147483648, %v352_v17  ;;  %v362_v23 = vand.u32 2147483647, %v352_v17  ;;  %vm358_vm4 = vweird.f32 %v352_v17 }
 0x141   : > { %v365_v25 = vor.u32 1.1754944e-38, %v364_v21  ;;  %vm363_vm6 = vcmp.eq.f32.partialorder %v362_v23, 8.507059e+37 }
 0x145   : > { %v648_v18 = vpop.eup %647 }
 0x146   : > { %v354_v19 = vmul.f32 %v648_v18, %v352_v17  ;;  %vm359_vm3 = vweird.f32 %v648_v18 }
 0x147   : > { %vm360_vm5 = vmor %vm358_vm4, %vm359_vm3 }
 0x148   : > { %v355_v20 = vsub.f32 1.0, %v354_v19 }
 0x14a   : > { %v356_v22 = vmul.f32 %v648_v18, %v355_v20 }
 0x14c   : > { %v357_v24 = vadd.f32 %v648_v18, %v356_v22 }
 0x14e   : > { %v361_v26 = vsel %vm360_vm5, %v648_v18, %v357_v24 }
 0x14f   : > { %v366_v27 = vsel %vm363_vm6, %v365_v25, %v361_v26 }
 0x150   : > { %v368_v28 = vsel %vm287_vm0, %v366_v27, -inf }
 0x151   : > { %v369_v29 = vrot.slane %v368_v28, 4 }
 0x153   : > { %v370_v30 = vmax.f32 %v368_v28, %v369_v29 }
 0x155   : > { %v371_v31 = vrot.slane %v370_v30, 2 }
 0x157   : > { %v372_v32 = vmax.f32 %v370_v30, %v371_v31 }
 0x159   : > { %v373_v33 = vrot.slane %v372_v32, 1 }
 0x15b   : > { %v374_v34 = vmax.f32 %v372_v32, %v373_v33 }
 0x15d   : > { %v375_v35 = vsel %vm287_vm0, %v366_v27, %v374_v34  ;;  %v377_v36 = vmul.f32 %v374_v34, %v269_v2 }
 0x15e   : > { %376 = vst [vmem:[%s268_s9] sm:$0x1f] %v375_v35  ;;  %s407_s9 = scalar_lea.sflag [#allocation3], %s240_s15 }
 0x15f   : > { %566 = vmatpush.msk.msra.mxu2 %vm287_vm0, %v377_v36 }
 0x160   : > { %567 = vmatmul.msk.f32.vlgmr.msra.gmra.mxu2 %vm274_vm1, %v378_v37 }
 0x1e3   : > { %v402_v38 = vpop.f32.mrf.mxu2 }
 0x1e4   : > { %405 = vst [vmem:[%s242_s8] sm:$0xf] %v402_v38 }
 0x1e5   : > { %676 = shalt.err (!%p673_p7)
}
 0x1e6   : > { %574 = dma.vmem_to_hbm [thread:$0]  (%p826_p3), %s430_s0, 64, %s432_s1, %s407_s9  }
 0x1e7 PF: > { %p580_p9 = scmp.ge.s32.totalorder %s743_s25, 2  ;;  %s446_s15 = sand.u32 1, %s715_s18  }
 0x1e8   : > { %s447_s17 = scalar_lea.sflag [#allocation3], %s446_s15 }
 0x1e9   : > { %p577_p10 = pnand %p580_p9, %p835_p8 }
 0x1eb   : > { %p578_p11 = pneg %p577_p10 }
 0x1ed   : > { %710 = dma.done.wait (%p578_p11), %s447_s17, 64  }
 0x1ee   : > { %712 = vsyncadd (%p578_p11), %s447_s17, 4294967232  ;;  %s19_s25 = sadd.s32 1, %s743_s25   ;;  %s944_s18 = smov %s719_s19 }
 0x1ef   : > { %p16_p12 = scmp.ge.s32.totalorder %s19_s25, 6   ;;  %s945_s19 = smov %s723_s20 }
 0x1f0   : > { %s946_s20 = smov %s844_s11  ;;  %s947_s21 = smov %s735_s23 }
 0x1f1   : > { %s948_s22 = smov %s739_s24  ;;  %s949_s23 = smov %s952_s28 }
 0x1f2   : > { %s950_s24 = smov %s956_s29  ;;  %18 = sbr.rel (!%p16_p12) target bundleno = 8 (0x8), region = 83 }
 0x1f7   :  { %464 = vsyncpa [#allocation3], 1 }
 0x1f8   :  { %466 = vsyncpa [#allocation3 + $0x1], 1 }

</bundles_post_ra>
